<compile_context>
chip_gen: v5e
topology: v5e:2x2
jax: 0.10.0
libtpu: 0.0.40
codegen_flags: <defaults>
</compile_context>

<pallas_src>
import functools

import jax
import jax.numpy as jnp
from jax.experimental import pallas as pl
from jax.experimental.pallas import tpu as pltpu


def _conv_bn_relu_kernel(x_ref, w_ref, scale_ref, bias_ref, o_ref,
                         *, TH, Wo, KH, KW, Cin, Cp):
    # x_ref:          (Hp, Wp, Cin)     bf16 zero-padded input (one batch element)
    # w_ref:          (KH*KW*Cin, Cp)   bf16 im2col-flattened weights (Cout padded to Cp)
    # scale/bias_ref: (1, Cp)           f32 folded BatchNorm affine
    # o_ref:          (TH, Wo, Cp)      f32 output row tile (lane-dense, Cp % 128 == 0)
    row0 = pl.multiple_of(pl.program_id(1) * TH, TH)

    # Halo'd row window for this output-row tile.
    rows = x_ref[pl.ds(row0, TH + KH - 1), :, :]             # (TH+KH-1, Wp, Cin)

    # Extract the KW column-shifted slabs ONCE; reuse across kh (the per-kh slices
    # below are leading-axis selections on values, no relayout).
    wslabs = [rows[:, kw:kw + Wo, :] for kw in range(KW)]    # KW x (TH+KH-1, Wo, Cin)

    # im2col: pack the KHxKW window into the contraction dim; K-order is
    # (kh, kw, cin) to match the weight reshape in the wrapper.
    pieces = [wslabs[kw][kh:kh + TH] for kh in range(KH) for kw in range(KW)]
    patch = jnp.concatenate(pieces, axis=-1)                 # (TH, Wo, KH*KW*Cin)
    patch = patch.reshape(TH * Wo, KH * KW * Cin)

    # Single MXU matmul, f32 accumulation.
    acc = jnp.dot(patch, w_ref[...], preferred_element_type=jnp.float32)

    # Folded BatchNorm + ReLU on the f32 accumulator (padded lanes stay 0).
    y = jnp.maximum(acc * scale_ref[...] + bias_ref[...], 0.0)
    o_ref[...] = y.reshape(TH, Wo, Cp).astype(o_ref.dtype)


@functools.partial(jax.jit, static_argnames=("eps", "padding"))
def basic_conv2d(x_nchw, weight_oihw, gamma, beta, running_mean, running_var,
                 *, eps=1e-3, padding=1):
    """Conv2d(stride=1, padding=padding, bias=False) + BatchNorm2d(eval) + ReLU."""
    N, Cin, H, W = x_nchw.shape
    Cout, Cin_w, KH, KW = weight_oihw.shape
    assert Cin == Cin_w
    # TODO(synk): only stride=1 / dilation=1 / groups=1 conv variants are implemented.

    Hp, Wp = H + 2 * padding, W + 2 * padding
    Ho, Wo = Hp - KH + 1, Wp - KW + 1

    LANE = 128
    Cp = ((Cout + LANE - 1) // LANE) * LANE      # lane-dense output channels

    # ---- glue (fused by XLA under jit): layout, pad, bf16 cast, BN folding ----
    x = jnp.transpose(x_nchw, (0, 2, 3, 1))                               # NHWC
    x = jnp.pad(x, ((0, 0), (padding, padding), (padding, padding), (0, 0)))
    x = x.astype(jnp.bfloat16)
    # TODO(synk): the zero border could be applied in-kernel with masked loads to
    # avoid any pre-pass; under jit the pad fuses with the transpose/cast anyway.

    w = jnp.transpose(weight_oihw, (2, 3, 1, 0))                          # KH,KW,Cin,Cout
    w = w.reshape(KH * KW * Cin, Cout)                                    # im2col K order
    w = jnp.pad(w, ((0, 0), (0, Cp - Cout))).astype(jnp.bfloat16)

    scale = (gamma / jnp.sqrt(running_var + eps)).astype(jnp.float32)
    bias = (beta - running_mean * scale).astype(jnp.float32)
    scale = jnp.pad(scale, (0, Cp - Cout)).reshape(1, Cp)
    bias = jnp.pad(bias, (0, Cp - Cout)).reshape(1, Cp)

    # Output-row tile: largest divisor of Ho keeping the matmul M = TH*Wo <= 1024.
    TH = 1
    for th in range(1, Ho + 1):
        if Ho % th == 0 and th * Wo <= 1024:
            TH = th
    n_row_tiles = Ho // TH

    kernel = functools.partial(_conv_bn_relu_kernel,
                               TH=TH, Wo=Wo, KH=KH, KW=KW, Cin=Cin, Cp=Cp)

    out_nhwc = pl.pallas_call(
        kernel,
        out_shape=jax.ShapeDtypeStruct((N, Ho, Wo, Cp), jnp.float32),
        grid=(N, n_row_tiles),
        in_specs=[
            # Padded image: VMEM-resident across the row-tile axis (constant index).
            pl.BlockSpec((pl.Squeezed(), Hp, Wp, Cin), lambda n, t: (n, 0, 0, 0)),
            # Grid-invariant weights / BN affine (constant index -> fetched once;
            # small enough that default double-buffering costs negligible VMEM).
            pl.BlockSpec((KH * KW * Cin, Cp), lambda n, t: (0, 0)),
            pl.BlockSpec((1, Cp), lambda n, t: (0, 0)),
            pl.BlockSpec((1, Cp), lambda n, t: (0, 0)),
        ],
        out_specs=pl.BlockSpec((pl.Squeezed(), TH, Wo, Cp),
                               lambda n, t: (n, t, 0, 0)),
        compiler_params=pltpu.CompilerParams(
            dimension_semantics=("parallel", "parallel")),
    )(x, w, scale, bias)

    out_nhwc = out_nhwc[:, :, :, :Cout]               # drop Cout lane padding
    return jnp.transpose(out_nhwc, (0, 3, 1, 2)).astype(x_nchw.dtype)


def _reference(x, w, gamma, beta, mean, var, eps=1e-3, padding=1):
    # Matches the kernel's bf16 inputs / f32 accumulation.
    xb = x.astype(jnp.bfloat16).astype(jnp.float32)
    wb = w.astype(jnp.bfloat16).astype(jnp.float32)
    y = jax.lax.conv_general_dilated(
        xb, wb, window_strides=(1, 1),
        padding=[(padding, padding), (padding, padding)],
        dimension_numbers=("NCHW", "OIHW", "NCHW"),
        precision=jax.lax.Precision.HIGHEST)
    scale = (gamma / jnp.sqrt(var + eps)).reshape(1, -1, 1, 1)
    bias = (beta - mean * gamma / jnp.sqrt(var + eps)).reshape(1, -1, 1, 1)
    return jnp.maximum(y * scale + bias, 0.0)


if __name__ == "__main__":
    key = jax.random.PRNGKey(0)
    kx, kw, kg, kb, km, kv = jax.random.split(key, 6)

    # BasicConv2d(in_channels=4, out_channels=8, kernel_size=3, padding=1)
    N, Cin, H, W = 2, 4, 16, 16
    Cout, KH, KW = 8, 3, 3

    x = jax.random.normal(kx, (N, Cin, H, W), dtype=jnp.float32)
    weight = jax.random.normal(kw, (Cout, Cin, KH, KW), dtype=jnp.float32) * 0.1
    gamma = jax.random.uniform(kg, (Cout,), jnp.float32, 0.5, 1.5)
    beta = jax.random.normal(kb, (Cout,), jnp.float32) * 0.1
    running_mean = jax.random.normal(km, (Cout,), jnp.float32) * 0.1
    running_var = jax.random.uniform(kv, (Cout,), jnp.float32, 0.5, 1.5)

    out = basic_conv2d(x, weight, gamma, beta, running_mean, running_var,
                       eps=1e-3, padding=1)
    out = jax.block_until_ready(out)

    ref = _reference(x, weight, gamma, beta, running_mean, running_var,
                     eps=1e-3, padding=1)
    assert out.shape == (N, Cout, H, W)
    assert jnp.allclose(out, ref, atol=1e-2, rtol=1e-2), "mismatch vs reference"

    print("KERNEL_OK")
</pallas_src>

<mosaic_0001>
module attributes {stable_mosaic.version = 11 : i64} {
  func.func @_conv_bn_relu_kernel(%arg0: i32, %arg1: i32, %arg2: memref<1x18x18x4xbf16, #tpu.memory_space<vmem>>, %arg3: memref<36x128xbf16, #tpu.memory_space<vmem>>, %arg4: memref<1x128xf32, #tpu.memory_space<vmem>>, %arg5: memref<1x128xf32, #tpu.memory_space<vmem>>, %arg6: memref<1x16x16x128xf32, #tpu.memory_space<vmem>>) attributes {dimension_semantics = [#tpu.dimension_semantics<parallel>, #tpu.dimension_semantics<parallel>], iteration_bounds = array<i64: 2, 1>, scalar_prefetch = 0 : i64, scratch_operands = 0 : i64, tpu.core_type = #tpu.core_type<tc>, window_params = [{transform_indices = @transform_0, window_bounds = array<i64: 1, 18, 18, 4>}, {pipeline_mode = #tpu.pipeline_mode<synchronous>, transform_indices = @transform_1, window_bounds = array<i64: 36, 128>}, {pipeline_mode = #tpu.pipeline_mode<synchronous>, transform_indices = @transform_2, window_bounds = array<i64: 1, 128>}, {pipeline_mode = #tpu.pipeline_mode<synchronous>, transform_indices = @transform_3, window_bounds = array<i64: 1, 128>}, {transform_indices = @transform_4, window_bounds = array<i64: 1, 16, 16, 128>}]} {
    %c16_i32 = arith.constant 16 : i32
    %0 = arith.muli %arg1, %c16_i32 : i32
    %1 = tpu.assume_multiple %0, 16 : i32
    %c0 = arith.constant 0 : index
    %2 = arith.index_cast %1 : i32 to index
    %c0_0 = arith.constant 0 : index
    %c0_1 = arith.constant 0 : index
    %3 = vector.load %arg2[%c0, %2, %c0_0, %c0_1] : memref<1x18x18x4xbf16, #tpu.memory_space<vmem>>, vector<1x18x18x4xbf16>
    %4 = vector.shape_cast %3 : vector<1x18x18x4xbf16> to vector<18x18x4xbf16>
    %5 = vector.extract_strided_slice %4 {offsets = [0, 0, 0], sizes = [18, 16, 4], strides = [1, 1, 1]} : vector<18x18x4xbf16> to vector<18x16x4xbf16>
    %6 = vector.extract_strided_slice %4 {offsets = [0, 1, 0], sizes = [18, 16, 4], strides = [1, 1, 1]} : vector<18x18x4xbf16> to vector<18x16x4xbf16>
    %7 = vector.extract_strided_slice %4 {offsets = [0, 2, 0], sizes = [18, 16, 4], strides = [1, 1, 1]} : vector<18x18x4xbf16> to vector<18x16x4xbf16>
    %8 = vector.extract_strided_slice %5 {offsets = [0, 0, 0], sizes = [16, 16, 4], strides = [1, 1, 1]} : vector<18x16x4xbf16> to vector<16x16x4xbf16>
    %9 = vector.extract_strided_slice %6 {offsets = [0, 0, 0], sizes = [16, 16, 4], strides = [1, 1, 1]} : vector<18x16x4xbf16> to vector<16x16x4xbf16>
    %10 = vector.extract_strided_slice %7 {offsets = [0, 0, 0], sizes = [16, 16, 4], strides = [1, 1, 1]} : vector<18x16x4xbf16> to vector<16x16x4xbf16>
    %11 = vector.extract_strided_slice %5 {offsets = [1, 0, 0], sizes = [16, 16, 4], strides = [1, 1, 1]} : vector<18x16x4xbf16> to vector<16x16x4xbf16>
    %12 = vector.extract_strided_slice %6 {offsets = [1, 0, 0], sizes = [16, 16, 4], strides = [1, 1, 1]} : vector<18x16x4xbf16> to vector<16x16x4xbf16>
    %13 = vector.extract_strided_slice %7 {offsets = [1, 0, 0], sizes = [16, 16, 4], strides = [1, 1, 1]} : vector<18x16x4xbf16> to vector<16x16x4xbf16>
    %14 = vector.extract_strided_slice %5 {offsets = [2, 0, 0], sizes = [16, 16, 4], strides = [1, 1, 1]} : vector<18x16x4xbf16> to vector<16x16x4xbf16>
    %15 = vector.extract_strided_slice %6 {offsets = [2, 0, 0], sizes = [16, 16, 4], strides = [1, 1, 1]} : vector<18x16x4xbf16> to vector<16x16x4xbf16>
    %16 = vector.extract_strided_slice %7 {offsets = [2, 0, 0], sizes = [16, 16, 4], strides = [1, 1, 1]} : vector<18x16x4xbf16> to vector<16x16x4xbf16>
    %17 = tpu.concatenate %8, %9, %10, %11, %12, %13, %14, %15, %16 in 2 : vector<16x16x4xbf16>, vector<16x16x4xbf16>, vector<16x16x4xbf16>, vector<16x16x4xbf16>, vector<16x16x4xbf16>, vector<16x16x4xbf16>, vector<16x16x4xbf16>, vector<16x16x4xbf16>, vector<16x16x4xbf16> -> vector<16x16x36xbf16>
    %18 = vector.shape_cast %17 : vector<16x16x36xbf16> to vector<256x36xbf16>
    %c0_2 = arith.constant 0 : index
    %c0_3 = arith.constant 0 : index
    %19 = vector.load %arg3[%c0_2, %c0_3] : memref<36x128xbf16, #tpu.memory_space<vmem>>, vector<36x128xbf16>
    %cst = arith.constant dense<0.000000e+00> : vector<256x128xf32>
    %20 = tpu.matmul %18, %19, %cst {dimension_numbers = #tpu.dot_dimension_numbers<[1], [0], [0], [1], [0, 0, 1, 1], [], []>} : vector<256x36xbf16>, vector<36x128xbf16>, vector<256x128xf32> -> vector<256x128xf32>
    %c0_4 = arith.constant 0 : index
    %c0_5 = arith.constant 0 : index
    %21 = vector.load %arg4[%c0_4, %c0_5] : memref<1x128xf32, #tpu.memory_space<vmem>>, vector<1x128xf32>
    %22 = vector.broadcast %21 : vector<1x128xf32> to vector<256x128xf32>
    %23 = arith.mulf %20, %22 : vector<256x128xf32>
    %c0_6 = arith.constant 0 : index
    %c0_7 = arith.constant 0 : index
    %24 = vector.load %arg5[%c0_6, %c0_7] : memref<1x128xf32, #tpu.memory_space<vmem>>, vector<1x128xf32>
    %25 = vector.broadcast %24 : vector<1x128xf32> to vector<256x128xf32>
    %26 = arith.addf %23, %25 : vector<256x128xf32>
    %cst_8 = arith.constant 0.000000e+00 : f32
    %27 = vector.broadcast %cst_8 : f32 to vector<256x128xf32>
    %28 = arith.maximumf %26, %27 : vector<256x128xf32>
    %29 = vector.shape_cast %28 : vector<256x128xf32> to vector<16x16x128xf32>
    %c0_9 = arith.constant 0 : index
    %c0_10 = arith.constant 0 : index
    %c0_11 = arith.constant 0 : index
    %c0_12 = arith.constant 0 : index
    %30 = vector.load %arg6[%c0_9, %c0_10, %c0_11, %c0_12] : memref<1x16x16x128xf32, #tpu.memory_space<vmem>>, vector<1x16x16x128xf32>
    %31 = vector.shape_cast %30 : vector<1x16x16x128xf32> to vector<16x16x128xf32>
    %32 = vector.shape_cast %29 : vector<16x16x128xf32> to vector<1x16x16x128xf32>
    tpu.vector_store %arg6[%c0_9, %c0_10, %c0_11, %c0_12], %32 {strides = array<i32>} : memref<1x16x16x128xf32, #tpu.memory_space<vmem>>, vector<1x16x16x128xf32>,
    return
  }
  func.func @transform_0(%arg0: i32, %arg1: i32) -> (i32, i32, i32, i32) {
    %c0_i32 = arith.constant 0 : i32
    %c0_i32_0 = arith.constant 0 : i32
    %c0_i32_1 = arith.constant 0 : i32
    %c0_i32_2 = arith.constant 0 : i32
    return %arg0, %c0_i32, %c0_i32_0, %c0_i32_1 : i32, i32, i32, i32
  }
  func.func @transform_1(%arg0: i32, %arg1: i32) -> (i32, i32) {
    %c0_i32 = arith.constant 0 : i32
    %c0_i32_0 = arith.constant 0 : i32
    %c0_i32_1 = arith.constant 0 : i32
    return %c0_i32, %c0_i32_0 : i32, i32
  }
  func.func @transform_2(%arg0: i32, %arg1: i32) -> (i32, i32) {
    %c0_i32 = arith.constant 0 : i32
    %c0_i32_0 = arith.constant 0 : i32
    %c0_i32_1 = arith.constant 0 : i32
    return %c0_i32, %c0_i32_0 : i32, i32
  }
  func.func @transform_3(%arg0: i32, %arg1: i32) -> (i32, i32) {
    %c0_i32 = arith.constant 0 : i32
    %c0_i32_0 = arith.constant 0 : i32
    %c0_i32_1 = arith.constant 0 : i32
    return %c0_i32, %c0_i32_0 : i32, i32
  }
  func.func @transform_4(%arg0: i32, %arg1: i32) -> (i32, i32, i32, i32) {
    %c0_i32 = arith.constant 0 : i32
    %c0_i32_0 = arith.constant 0 : i32
    %c0_i32_1 = arith.constant 0 : i32
    return %arg0, %arg1, %c0_i32, %c0_i32_0 : i32, i32, i32, i32
  }
}

</mosaic_0001>

<bundles_post_ra>
// kernel: basic_conv2d.1
= control target key start
LH: loop header
LB: loop body
LE: loop exit
PB: predicated region body
PF: predicated region fallthrough
CT: control target
= control target key end

     0   :  { %s1818_s15 = smov 0   ;;  %s1820_s16 = smov 0   ;;  %s2747_s0 = inlined_call_operand.vmem [shape: bf16[2,18,18,4], index: 0, kind: input, shape index: {}]   ;;  %s2748_s1 = inlined_call_operand.vmem [shape: bf16[36,128], index: 1, kind: input, shape index: {}]   ;;  %s2749_s2 = inlined_call_operand.vmem [shape: f32[1,128], index: 2, kind: input, shape index: {}]   ;;  %s2750_s3 = inlined_call_operand.vmem [shape: f32[1,128], index: 3, kind: input, shape index: {}]   ;;  %s2751_s4 = inlined_call_operand.vmem [shape: f32[2,16,16,128], index: 4, kind: output, shape index: {}]  }
   0x1   :  { %s1822_s17 = smov 0  }
   0x2 LB: > { %s26_s18 = sadd.s32 1, %s1779_s16  ;;  %p1593_p0 = scmp.ge.s32.totalorder %s1783_s17, 1  ;;  %s1783_s17 = sphi %s1822_s17, %s14_s17   ;;  %s1779_s16 = sphi %s1820_s16, %s2765_s16   ;;  %s1775_s15 = sphi %s1818_s15, %s2764_s15  }
   0x3   : > { %p28_p1 = scmp.ge.s32.totalorder %s26_s18, 2  ;;  %p176_p2 = scmp.lt.s32.totalorder %s1783_s17, 3 }
   0x5   : > { %s2767_s18 = smov (%p28_p1, %s26_s18), 0  ;;  %p177_p3 = pnand %p1593_p0, %p176_p2 }
   0x7   : > { %180 = sbr.rel (%p177_p3) target bundleno = 622 (0x26e), region = 36 }
   0xc   : > { %p207_p4 = scmp.lt.s32.totalorder %s1775_s15, 1  ;;  %vm410_vm0 = vsmask.f32 7424  ;;  %s1785_s23 = smov 4   ;;  %vm635_vm1 = vcmask 1046528   ;;  %vm987_vm2 = vcmask 64512  }
   0xd   : > { %s1786_s24 = smov 8   ;;  %s1787_s25 = smov 12   ;;  %vm954_vm3 = vcmask 31744   ;;  %vm1020_vm4 = vcmask 97280   ;;  %vm1271_vm5 = vcmask 1041408   ;;  %vm1053_vm6 = vcmask 130048  }
   0xe   : > { %s2769_s15 = smov (!%p207_p4, %s1775_s15), 1  ;;  %s1788_s26 = smov 16   ;;  %vm1086_vm7 = vcmask 162816   ;;  %vm1119_vm8 = vcmask 195584   ;;  %vm1152_vm9 = vcmask 228352   ;;  %vm1185_vm10 = vcmask 261120  }
   0xf   : > { %s1725_s19 = smul.u32 216, %s2769_s15  ;;  %s1789_s27 = smov 24   ;;  %vm1238_vm11 = vcmask 293888  }
  0x10   : > { %s1790_s28 = smov 20   ;;  %s1791_s29 = smov 28  }
  0x11   : > { %s1842_s22 = scalar_lea.vmem %s2747_s0, %s1725_s19  ;;  %s1792_s30 = smov 32  }
  0x12   : > { %v1845_v0 = vld [vmem:[%s1842_s22 + $0x30] sm:$0xff]  ;;  %v242_v1 = vld [vmem:[%s1842_s22 + $0x38] sm:$0x1]  ;;  %v236_v4 = vld [vmem:[%s1842_s22 + $0x20] sm:$0x1]  ;;  %s1695_s19 = sshll.u32 %s2769_s15, 8 }
  0x13   : > { %v1849_v2 = vld [vmem:[%s1842_s22 + $0x18] sm:$0xff]  ;;  %v382_v3 = vunpack.c.l.b16 %v242_v1  ;;  %v1853_v5 = vld [vmem:[%s1842_s22] sm:$0xff]  ;;  %v230_v6 = vld [vmem:[%s1842_s22 + $0x8] sm:$0x1]  ;;  %v460_v7 = vshrl.u32 %v1845_v0, 16  ;;  %v462_v8 = vshll.u32 %v1845_v0, 16  ;;  %v380_v9 = vunpack.c.l.b16 %v236_v4 }
  0x14   : > { %v436_v10 = vshrl.u32 %v1849_v2, 16  ;;  %v245_v11 = vld [vmem:[%s1842_s22 + $0x44] sm:$0x1]  ;;  %v438_v13 = vshll.u32 %v1849_v2, 16  ;;  %v378_v14 = vunpack.c.l.b16 %v230_v6  ;;  %v412_v15 = vshrl.u32 %v1853_v5, 16  ;;  %v1865_v16 = vld [vmem:[%s1842_s22 + $0x3c] sm:$0xff] }
  0x15   : > { %v1860_v12 = vpack.c.b16 %v382_v3, %v382_v3  ;;  %v464_v17 = vrot.slane %v462_v8, 1  ;;  %v1867_v18 = vpack.c.b16 %v380_v9, %v380_v9  ;;  %v414_v19 = vshll.u32 %v1853_v5, 16  ;;  %v239_v25 = vld [vmem:[%s1842_s22 + $0x2c] sm:$0x1]  ;;  %v1879_v30 = vld [vmem:[%s1842_s22 + $0x24] sm:$0xff]  ;;  %v1912_v59 = vld [vmem:[%s1842_s22 + $0x54] sm:$0xff] }
  0x16   : > { %v383_v20 = vunpack.c.l.b16 %v245_v11  ;;  %v440_v22 = vrot.slane %v438_v13, 1  ;;  %v1871_v23 = vpack.c.b16 %v378_v14, %v378_v14  ;;  %v472_v24 = vshrl.u32 %v1865_v16, 16  ;;  %v1885_v39 = vld [vmem:[%s1842_s22 + $0xc] sm:$0xff]  ;;  %v233_v40 = vld [vmem:[%s1842_s22 + $0x14] sm:$0x1]  ;;  %v1893_v45 = vld [vmem:[%s1842_s22 + $0x60] sm:$0xff] }
  0x17   : > { %v467_v21 = vshll.u32 %v1860_v12, 16  ;;  %v465_v26 = vor.u32 %v464_v17, %v460_v7  ;;  %v443_v27 = vshll.u32 %v1867_v18, 16  ;;  %v416_v28 = vrot.slane %v414_v19, 1  ;;  %v254_v46 = vld [vmem:[%s1842_s22 + $0x68] sm:$0x1] }
  0x18   : > { %v1876_v29 = vpack.c.b16 %v383_v20, %v383_v20  ;;  %v441_v32 = vor.u32 %v440_v22, %v436_v10  ;;  %v419_v33 = vshll.u32 %v1871_v23, 16  ;;  %v474_v34 = vshll.u32 %v1865_v16, 16  ;;  %v251_v60 = vld [vmem:[%s1842_s22 + $0x5c] sm:$0x1]  ;;  %v1925_v8 = vld [vmem:[%s1842_s22 + $0x48] sm:$0xff] }
  0x19   : > { %v469_v31 = vrot.slane %v467_v21, 1  ;;  %v445_v35 = vrot.slane %v443_v27, 1  ;;  %v417_v36 = vor.u32 %v416_v28, %v412_v15  ;;  %v381_v38 = vunpack.c.l.b16 %v239_v25  ;;  %v248_v9 = vld [vmem:[%s1842_s22 + $0x50] sm:$0x1]  ;;  %v263_v21 = vld [vmem:[%s1842_s22 + $0x8c] sm:$0x1] }
  0x1a   : > { %v479_v37 = vshll.u32 %v1876_v29, 16  ;;  %v421_v42 = vrot.slane %v419_v33, 1  ;;  %v476_v43 = vrot.slane %v474_v34, 1  ;;  %v448_v44 = vshrl.u32 %v1879_v30, 16  ;;  %v1939_v27 = vld [vmem:[%s1842_s22 + $0x84] sm:$0xff]  ;;  %v1946_v34 = vld [vmem:[%s1842_s22 + $0x78] sm:$0xff] }
  0x1b   : > { %v1889_v41 = vsel %vm410_vm0, %v465_v26, %v469_v31  ;;  %v1899_v47 = vsel %vm410_vm0, %v441_v32, %v445_v35  ;;  %v1901_v49 = vpack.c.b16 %v381_v38, %v381_v38  ;;  %v450_v50 = vshll.u32 %v1879_v30, 16 }
  0x1c   : > { %611 = vrot.lane.b32.xlu2 %v1889_v41, %s1785_s23  ;;  %v481_v48 = vrot.slane %v479_v37, 1  ;;  %607 = vrot.lane.b32.xlu1 %v1899_v47, %s1785_s23  ;;  %v422_v51 = vsel %vm410_vm0, %v417_v36, %v421_v42  ;;  %v477_v52 = vor.u32 %v476_v43, %v472_v24  ;;  %v379_v53 = vunpack.c.l.b16 %v233_v40  ;;  %v260_v40 = vld [vmem:[%s1842_s22 + $0x80] sm:$0x1] }
  0x1d   : > { %v424_v54 = vshrl.u32 %v1885_v39, 16  ;;  %603 = vrot.lane.b32.xlu0 %v422_v51, %s1785_s23  ;;  %v452_v55 = vrot.slane %v450_v50, 1  ;;  %v455_v56 = vshll.u32 %v1901_v49, 16  ;;  %v426_v57 = vshll.u32 %v1885_v39, 16 }
  0x1e   : > { %v386_v58 = vunpack.c.l.b16 %v254_v46  ;;  %v1916_v61 = vsel %vm410_vm0, %v477_v52, %v481_v48  ;;  %v1918_v62 = vpack.c.b16 %v379_v53, %v379_v53  ;;  %v508_v63 = vshrl.u32 %v1893_v45, 16  ;;  %v1965_v52 = vld [vmem:[%s1842_s22 + $0x6c] sm:$0xff]  ;;  %v257_v53 = vld [vmem:[%s1842_s22 + $0x74] sm:$0x1] }
  0x1f   : > { %2756 = vst [vmem:[#allocation2_spill] sm:$0xff] %v1916_v61  ;;  %v510_v1 = vshll.u32 %v1893_v45, 16  ;;  %v453_v3 = vor.u32 %v452_v55, %v448_v44  ;;  %v457_v4 = vrot.slane %v455_v56, 1  ;;  %v428_v6 = vrot.slane %v426_v57, 1 }
  0x20   : > { %v1922_v7 = vpack.c.b16 %v386_v58, %v386_v58  ;;  %v431_v10 = vshll.u32 %v1918_v62, 16  ;;  %v385_v13 = vunpack.c.l.b16 %v251_v60  ;;  %v496_v14 = vshrl.u32 %v1912_v59, 16  ;;  %v1973_v58 = vld [vmem:[%s1842_s22 + $0xa8] sm:$0xff] }
  0x21   : > { %v512_v11 = vrot.slane %v510_v1, 1  ;;  %v1931_v15 = vsel %vm410_vm0, %v453_v3, %v457_v4  ;;  %v429_v17 = vor.u32 %v428_v6, %v424_v54  ;;  %v498_v20 = vshll.u32 %v1912_v59, 16  ;;  %v272_v4 = vld [vmem:[%s1842_s22 + $0xb0] sm:$0x1] }
  0x22   : > { %v515_v19 = vshll.u32 %v1922_v7, 16  ;;  %v433_v22 = vrot.slane %v431_v10, 1  ;;  %v1936_v25 = vpack.c.b16 %v385_v13, %v385_v13  ;;  %v384_v26 = vunpack.c.l.b16 %v248_v9 }
  0x23   : > { %v513_v24 = vor.u32 %v512_v11, %v508_v63  ;;  %v500_v31 = vrot.slane %v498_v20, 1  ;;  %v484_v32 = vshrl.u32 %v1925_v8, 16  ;;  %v486_v33 = vshll.u32 %v1925_v8, 16  ;;  %v1989_v20 = vld [vmem:[%s1842_s22 + $0x9c] sm:$0xff] }
  0x24   : > { %613 = vrot.lane.b32.xlu2 %v1916_v61, %s1785_s23  ;;  %v517_v28 = vrot.slane %v515_v19, 1  ;;  %609 = vrot.lane.b32.xlu1 %v1931_v15, %s1785_s23  ;;  %v1951_v35 = vsel %vm410_vm0, %v429_v17, %v433_v22  ;;  %v503_v36 = vshll.u32 %v1936_v25, 16  ;;  %v1954_v37 = vpack.c.b16 %v384_v26, %v384_v26 }
  0x25   : > { %v389_v38 = vunpack.c.l.b16 %v263_v21  ;;  %605 = vrot.lane.b32.xlu0 %v1951_v35, %s1785_s23  ;;  %v501_v42 = vor.u32 %v500_v31, %v496_v14  ;;  %v488_v43 = vrot.slane %v486_v33, 1  ;;  %v544_v44 = vshrl.u32 %v1939_v27, 16  ;;  %v269_v21 = vld [vmem:[%s1842_s22 + $0xa4] sm:$0x1] }
  0x26   : > { %v505_v46 = vrot.slane %v503_v36, 1  ;;  %v491_v48 = vshll.u32 %v1954_v37, 16  ;;  %v546_v51 = vshll.u32 %v1939_v27, 16  ;;  %v1969_v54 = vsel %vm410_vm0, %v513_v24, %v517_v28 }
  0x27   : > { %v1961_v50 = vpack.c.b16 %v389_v38, %v389_v38  ;;  %v489_v55 = vor.u32 %v488_v43, %v484_v32  ;;  %v388_v56 = vunpack.c.l.b16 %v260_v40  ;;  %v534_v57 = vshll.u32 %v1946_v34, 16  ;;  %v2006_v43 = vld [vmem:[%s1842_s22 + $0x90] sm:$0xff] }
  0x28   : > { %v493_v60 = vrot.slane %v491_v48, 1  ;;  %v548_v63 = vrot.slane %v546_v51, 1  ;;  %v532_v3 = vshrl.u32 %v1946_v34, 16  ;;  %v1979_v6 = vsel %vm410_vm0, %v501_v42, %v505_v46 }
  0x29   : > { %v551_v1 = vshll.u32 %v1961_v50, 16  ;;  %v1981_v9 = vpack.c.b16 %v388_v56, %v388_v56  ;;  %v536_v10 = vrot.slane %v534_v57, 1  ;;  %v387_v11 = vunpack.c.l.b16 %v257_v53 }
  0x2a   : > { %v1984_v13 = vsel %vm410_vm0, %v489_v55, %v493_v60  ;;  %v549_v14 = vor.u32 %v548_v63, %v544_v44  ;;  %v520_v17 = vshrl.u32 %v1965_v52, 16  ;;  %v522_v19 = vshll.u32 %v1965_v52, 16  ;;  %v266_v44 = vld [vmem:[%s1842_s22 + $0x98] sm:$0x1] }
  0x2b   : > { %v553_v22 = vrot.slane %v551_v1, 1  ;;  %v539_v24 = vshll.u32 %v1981_v9, 16  ;;  %v1995_v26 = vpack.c.b16 %v387_v11, %v387_v11  ;;  %v392_v28 = vunpack.c.l.b16 %v272_v4 }
  0x2c   : > { %619 = vrot.lane.b32.xlu2 %v1969_v54, %s1785_s23  ;;  %617 = vrot.lane.b32.xlu1 %v1979_v6, %s1785_s23  ;;  %v537_v31 = vor.u32 %v536_v10, %v532_v3  ;;  %v524_v32 = vrot.slane %v522_v19, 1  ;;  %v582_v33 = vshll.u32 %v1973_v58, 16  ;;  %v391_v42 = vunpack.c.l.b16 %v269_v21 }
  0x2d   : > { %615 = vrot.lane.b32.xlu0 %v1984_v13, %s1785_s23  ;;  %v541_v36 = vrot.slane %v539_v24, 1  ;;  %v527_v38 = vshll.u32 %v1995_v26, 16  ;;  %v2003_v40 = vpack.c.b16 %v392_v28, %v392_v28  ;;  %v570_v48 = vshll.u32 %v1989_v20, 16 }
  0x2e   : > { %v525_v46 = vor.u32 %v524_v32, %v520_v17  ;;  %v2011_v51 = vsel %vm410_vm0, %v549_v14, %v553_v22  ;;  %v580_v55 = vshrl.u32 %v1973_v58, 16  ;;  %v2014_v56 = vpack.c.b16 %v391_v42, %v391_v42  ;;  %v275_v14 = vld [vmem:[%s1842_s22 + $0xbc] sm:$0x1]  ;;  %v2031_v22 = vld [vmem:[%s1842_s22 + $0xb4] sm:$0xff] }
  0x2f   : > { %v529_v53 = vrot.slane %v527_v38, 1  ;;  %v584_v57 = vrot.slane %v582_v33, 1  ;;  %v587_v60 = vshll.u32 %v2003_v40, 16  ;;  %v568_v63 = vshrl.u32 %v1989_v20, 16 }
  0x30   : > { %v390_v1 = vunpack.c.l.b16 %v266_v44  ;;  %v2019_v3 = vsel %vm410_vm0, %v537_v31, %v541_v36  ;;  %v572_v4 = vrot.slane %v570_v48, 1  ;;  %v575_v10 = vshll.u32 %v2014_v56, 16 }
  0x31   : > { %v558_v11 = vshll.u32 %v2006_v43, 16  ;;  %v2025_v17 = vsel %vm410_vm0, %v525_v46, %v529_v53  ;;  %v556_v21 = vshrl.u32 %v2006_v43, 16  ;;  %v585_v28 = vor.u32 %v584_v57, %v580_v55 }
  0x32   : > { %2757 = vst [vmem:[#allocation3_spill] sm:$0xff] %v2025_v17  ;;  %v2027_v19 = vpack.c.b16 %v390_v1, %v390_v1  ;;  %v589_v31 = vrot.slane %v587_v60, 1  ;;  %v393_v33 = vunpack.c.l.b16 %v275_v14  ;;  %v573_v36 = vor.u32 %v572_v4, %v568_v63 }
  0x33   : > { %v560_v24 = vrot.slane %v558_v11, 1  ;;  %v577_v38 = vrot.slane %v575_v10, 1  ;;  %v594_v48 = vshll.u32 %v2031_v22, 16  ;;  %v592_v60 = vshrl.u32 %v2031_v22, 16 }
  0x34   : > { %625 = vrot.lane.b32.xlu2 %v2011_v51, %s1785_s23  ;;  %623 = vrot.lane.b32.xlu1 %v2019_v3, %s1785_s23  ;;  %v563_v32 = vshll.u32 %v2027_v19, 16  ;;  %v2040_v46 = vpack.c.b16 %v393_v33, %v393_v33  ;;  %v2044_v53 = vsel %vm410_vm0, %v585_v28, %v589_v31  ;;  %v639_v4 = vrot.slane %v1885_v39, 1 }
  0x35   : > { %621 = vrot.lane.b32.xlu0 %v2025_v17, %s1785_s23  ;;  %v561_v42 = vor.u32 %v560_v24, %v556_v21  ;;  %v2047_v55 = vsel %vm410_vm0, %v573_v36, %v577_v38  ;;  %v596_v1 = vrot.slane %v594_v48, 1  ;;  %v640_v10 = vrot.slane %v1918_v62, 1 }
  0x36   : > { %v565_v44 = vrot.slane %v563_v32, 1  ;;  %v599_v63 = vshll.u32 %v2040_v46, 16  ;;  %v636_v11 = vrot.slane %v1853_v5, 1  ;;  %v637_v14 = vrot.slane %v1871_v23, 1 }
  0x37   : > { %v597_v21 = vor.u32 %v596_v1, %v592_v60  ;;  %v2065_v28 = vsel %vm635_vm1, %v639_v4, %v640_v10  ;;  %v648_v62 = vrot.slane %v1845_v0, 1  ;;  %v649_v23 = vrot.slane %v1860_v12, 1 }
  0x38   : > { %v2050_v57 = vsel %vm410_vm0, %v561_v42, %v565_v44  ;;  %v601_v24 = vrot.slane %v599_v63, 1  ;;  %v638_v31 = vsel %vm635_vm1, %v636_v11, %v637_v14  ;;  %v645_v33 = vrot.slane %v1879_v30, 1 }
  0x39   : > { %v646_v36 = vrot.slane %v1901_v49, 1  ;;  %v642_v38 = vrot.slane %v1849_v2, 1  ;;  %v643_v42 = vrot.slane %v1867_v18, 1  ;;  %v2083_v44 = vsel %vm635_vm1, %v648_v62, %v649_v23 }
  0x3a   : > { %v2069_v32 = vsel %vm410_vm0, %v597_v21, %v601_v24  ;;  %v657_v12 = vrot.slane %v1912_v59, 1  ;;  %v658_v49 = vrot.slane %v1936_v25, 1  ;;  %v654_v18 = vrot.slane %v1925_v8, 1 }
  0x3b   : > { %v2086_v48 = vsel %vm635_vm1, %v645_v33, %v646_v36  ;;  %v2089_v60 = vsel %vm635_vm1, %v642_v38, %v643_v42  ;;  %v655_v1 = vrot.slane %v1954_v37, 1  ;;  %v651_v63 = vrot.slane %v1865_v16, 1 }
  0x3c   : > { %631 = vrot.lane.b32.xlu2 %v2044_v53, %s1785_s23  ;;  %629 = vrot.lane.b32.xlu1 %v2047_v55, %s1785_s23  ;;  %v652_v4 = vrot.slane %v1876_v29, 1  ;;  %v2104_v10 = vsel %vm635_vm1, %v657_v12, %v658_v49  ;;  %v666_v25 = vrot.slane %v1946_v34, 1  ;;  %v667_v37 = vrot.slane %v1981_v9, 1 }
  0x3d   : > { %627 = vrot.lane.b32.xlu0 %v2050_v57, %s1785_s23  ;;  %v2107_v11 = vsel %vm635_vm1, %v654_v18, %v655_v1  ;;  %v663_v29 = vrot.slane %v1965_v52, 1  ;;  %v664_v21 = vrot.slane %v1995_v26, 1  ;;  %v660_v24 = vrot.slane %v1893_v45, 1 }
  0x3e   : > { %v2110_v14 = vsel %vm635_vm1, %v651_v63, %v652_v4  ;;  %v2125_v62 = vsel %vm635_vm1, %v666_v25, %v667_v37  ;;  %v675_v9 = vrot.slane %v1989_v20, 1  ;;  %v676_v26 = vrot.slane %v2014_v56, 1 }
  0x3f   : > { %2758 = vst [vmem:[#allocation4_spill] sm:$0xff] %v2110_v14  ;;  %v2128_v23 = vsel %vm635_vm1, %v663_v29, %v664_v21  ;;  %v673_v36 = vrot.slane %v2027_v19, 1  ;;  %v669_v38 = vrot.slane %v1939_v27, 1  ;;  %v670_v42 = vrot.slane %v1961_v50, 1 }
  0x40   : > { %2759 = vst [vmem:[#allocation5_spill] sm:$0xff] %v2128_v23  ;;  %v2146_v12 = vsel %vm635_vm1, %v675_v9, %v676_v26  ;;  %v681_v50 = vrot.slane %v2031_v22, 1  ;;  %v682_v56 = vrot.slane %v2040_v46, 1  ;;  %v678_v19 = vrot.slane %v1973_v58, 1 }
  0x41   : > { %v2152_v18 = vsel %vm635_vm1, %v669_v38, %v670_v42  ;;  %v679_v1 = vrot.slane %v2003_v40, 1 }
  0x42   : > { %v2165_v63 = vsel %vm635_vm1, %v681_v50, %v682_v56 }
  0x43   : > { %v2168_v4 = vsel %vm635_vm1, %v678_v19, %v679_v1 }
  0x44   : > { %686 = vrot.lane.b32.xlu2 %v2065_v28, %s1786_s24  ;;  %684 = vrot.lane.b32.xlu1 %v638_v31, %s1786_s24  ;;  %v661_v31 = vrot.slane %v1922_v7, 1  ;;  %v672_v7 = vrot.slane %v2006_v43, 1 }
  0x45   : > { %633 = vrot.lane.b32.xlu0 %v2069_v32, %s1785_s23 }
  0x46   : > { %v2131_v33 = vsel %vm635_vm1, %v660_v24, %v661_v31  ;;  %v2149_v49 = vsel %vm635_vm1, %v672_v7, %v673_v36  ;;  %v2194_v24 = vld [vmem:[%s1842_s22 + $0xc0] sm:$0xff] }
  0x4c   : > { %692 = vrot.lane.b32.xlu2 %v2083_v44, %s1786_s24  ;;  %690 = vrot.lane.b32.xlu1 %v2086_v48, %s1786_s24 }
  0x4d   : > { %688 = vrot.lane.b32.xlu0 %v2089_v60, %s1786_s24 }
  0x54   : > { %698 = vrot.lane.b32.xlu2 %v2104_v10, %s1786_s24  ;;  %696 = vrot.lane.b32.xlu1 %v2107_v11, %s1786_s24 }
  0x55   : > { %694 = vrot.lane.b32.xlu0 %v2110_v14, %s1786_s24 }
  0x5c   : > { %704 = vrot.lane.b32.xlu2 %v2125_v62, %s1786_s24  ;;  %702 = vrot.lane.b32.xlu1 %v2128_v23, %s1786_s24 }
  0x5d   : > { %700 = vrot.lane.b32.xlu0 %v2131_v33, %s1786_s24 }
  0x64   : > { %710 = vrot.lane.b32.xlu2 %v2146_v12, %s1786_s24  ;;  %708 = vrot.lane.b32.xlu1 %v2149_v49, %s1786_s24 }
  0x65   : > { %706 = vrot.lane.b32.xlu0 %v2152_v18, %s1786_s24 }
  0x6c   : > { %721 = vrot.lane.b32.xlu2 %v1885_v39, %s1787_s25  ;;  %714 = vrot.lane.b32.xlu1 %v2165_v63, %s1786_s24 }
  0x6d   : > { %712 = vrot.lane.b32.xlu0 %v2168_v4, %s1786_s24 }
  0x74   : > { %727 = vrot.lane.b32.xlu2 %v1845_v0, %s1787_s25  ;;  %725 = vrot.lane.b32.xlu1 %v1879_v30, %s1787_s25 }
  0x75   : > { %723 = vrot.lane.b32.xlu0 %v1849_v2, %s1787_s25 }
  0x76   : > { %v612_v40 = vpop.permute.xlu2 %611 }
  0x7c   : > { %733 = vrot.lane.b32.xlu2 %v1912_v59, %s1787_s25  ;;  %731 = vrot.lane.b32.xlu1 %v1925_v8, %s1787_s25 }
  0x7d   : > { %729 = vrot.lane.b32.xlu0 %v1865_v16, %s1787_s25 }
  0x7e   : > { %v2181_v46 = vpop.permute.xlu2 %613 }
  0x84   : > { %739 = vrot.lane.b32.xlu2 %v1946_v34, %s1787_s25  ;;  %737 = vrot.lane.b32.xlu1 %v1965_v52, %s1787_s25 }
  0x85   : > { %735 = vrot.lane.b32.xlu0 %v1893_v45, %s1787_s25 }
  0x86   : > { %v2186_v25 = vpop.permute.xlu2 %619 }
  0x8c   : > { %745 = vrot.lane.b32.xlu2 %v1989_v20, %s1787_s25  ;;  %743 = vrot.lane.b32.xlu1 %v2006_v43, %s1787_s25 }
  0x8d   : > { %741 = vrot.lane.b32.xlu0 %v1939_v27, %s1787_s25 }
  0x8e   : > { %v2191_v37 = vpop.permute.xlu2 %625  ;;  %v608_v29 = vpop.permute.xlu1 %607 }
  0x8f   : > { %v604_v21 = vpop.permute.xlu0 %603 }
  0x94   : > { %751 = vrot.lane.b32.xlu2 %v2194_v24, %s1787_s25  ;;  %749 = vrot.lane.b32.xlu1 %v2031_v22, %s1787_s25 }
  0x95   : > { %747 = vrot.lane.b32.xlu0 %v1973_v58, %s1787_s25 }
  0x96   : > { %v2199_v31 = vpop.permute.xlu2 %631  ;;  %v610_v9 = vpop.permute.xlu1 %609 }
  0x97   : > { %v606_v26 = vpop.permute.xlu0 %605 }
  0x98   : > { %v958_v7 = vsel %vm954_vm3, %v1885_v39, %v606_v26  ;;  %v964_v39 = vsel %vm954_vm3, %v1845_v0, %v612_v40 }
  0x9c   : > { %792 = vrot.lane.b32.xlu2 %v2047_v55, %s1788_s26  ;;  %784 = vrot.lane.b32.xlu1 %v2025_v17, %s1788_s26 }
  0x9d   : > { %768 = vrot.lane.b32.xlu0 %v1951_v35, %s1788_s26 }
  0x9e   : > { %v687_v36 = vpop.permute.xlu2 %686  ;;  %v618_v38 = vpop.permute.xlu1 %617 }
  0x9f   : > { %v2210_v42 = vsel %vm987_vm2, %v958_v7, %v687_v36  ;;  %v616_v50 = vpop.permute.xlu0 %615  ;;  %v970_v26 = vsel %vm954_vm3, %v1912_v59, %v618_v38 }
  0xa4   : > { %856 = vrot.lane.b32.xlu2 %v1946_v34, %s1789_s27  ;;  %827 = vrot.lane.b32.xlu1 %v2146_v12, %s1790_s28 }
  0xa5   : > { %819 = vrot.lane.b32.xlu0 %v2128_v23, %s1790_s28  ;;  %v956_v23 = vsel %vm954_vm3, %v1853_v5, %v604_v21  ;;  %v962_v21 = vsel %vm954_vm3, %v1879_v30, %v610_v9  ;;  %v968_v9 = vsel %vm954_vm3, %v1925_v8, %v616_v50  ;;  %v972_v50 = vsel %vm954_vm3, %v1893_v45, %v2186_v25 }
  0xa6   : > { %v693_v35 = vpop.permute.xlu2 %692  ;;  %v624_v56 = vpop.permute.xlu1 %623 }
  0xa7   : > { %v2221_v19 = vsel %vm987_vm2, %v964_v39, %v693_v35  ;;  %v622_v1 = vpop.permute.xlu0 %621  ;;  %v976_v35 = vsel %vm954_vm3, %v1946_v34, %v624_v56 }
  0xac   : > { %911 = vrot.lane.b32.xlu2 %v2044_v53, %s1791_s29  ;;  %903 = vrot.lane.b32.xlu1 %v2019_v3, %s1791_s29 }
  0xad   : > { %864 = vrot.lane.b32.xlu0 %v1973_v58, %s1789_s27 }
  0xae   : > { %v699_v40 = vpop.permute.xlu2 %698  ;;  %v630_v7 = vpop.permute.xlu1 %629 }
  0xaf   : > { %v2232_v36 = vsel %vm987_vm2, %v970_v26, %v699_v40  ;;  %v628_v39 = vpop.permute.xlu0 %627  ;;  %v982_v34 = vsel %vm954_vm3, %v1989_v20, %v630_v7  ;;  %v966_v7 = vsel %vm954_vm3, %v1865_v16, %v2181_v46 }
  0xb4   : > { %776 = vrot.lane.b32.xlu2 %v1916_v61, %s1788_s26  ;;  %946 = vrot.lane.b32.xlu1 %v2168_v4, %s1792_s30 }
  0xb5   : > { %938 = vrot.lane.b32.xlu0 %v2125_v62, %s1792_s30 }
  0xb6   : > { %v705_v38 = vpop.permute.xlu2 %704  ;;  %v685_v40 = vpop.permute.xlu1 %684 }
  0xb7   : > { %v2245_v26 = vsel %vm987_vm2, %v976_v35, %v705_v38  ;;  %v989_v61 = vsel %vm987_vm2, %v956_v23, %v685_v40  ;;  %v634_v17 = vpop.permute.xlu0 %633  ;;  %v960_v35 = vsel %vm954_vm3, %v1849_v2, %v608_v29 }
  0xbc   : > { %840 = vrot.lane.b32.xlu2 %v1849_v2, %s1789_s27  ;;  %811 = vrot.lane.b32.xlu1 %v2110_v14, %s1790_s28 }
  0xbd   : > { %803 = vrot.lane.b32.xlu0 %v2065_v28, %s1790_s28 }
  0xbe   : > { %v711_v5 = vpop.permute.xlu2 %710  ;;  %v691_v23 = vpop.permute.xlu1 %690 }
  0xbf   : > { %v2259_v56 = vsel %vm987_vm2, %v982_v34, %v711_v5  ;;  %v995_v38 = vsel %vm987_vm2, %v962_v21, %v691_v23  ;;  %v689_v40 = vpop.permute.xlu0 %688 }
  0xc0   : > { %v993_v14 = vsel %vm987_vm2, %v960_v35, %v689_v40 }
  0xc4   : > { %895 = vrot.lane.b32.xlu2 %v1984_v13, %s1791_s29  ;;  %887 = vrot.lane.b32.xlu1 %v1899_v47, %s1791_s29 }
  0xc5   : > { %848 = vrot.lane.b32.xlu0 %v1925_v8, %s1789_s27  ;;  %v974_v8 = vsel %vm954_vm3, %v1965_v52, %v622_v1 }
  0xc6   : > { %v722_v28 = vpop.permute.xlu2 %721  ;;  %v697_v29 = vpop.permute.xlu1 %696 }
  0xc7   : > { %v2274_v2 = vsel %vm1020_vm4, %v989_v61, %v722_v28  ;;  %v1001_v34 = vsel %vm987_vm2, %v968_v9, %v697_v29  ;;  %v695_v5 = vpop.permute.xlu0 %694  ;;  %v978_v28 = vsel %vm954_vm3, %v1939_v27, %v2191_v37 }
  0xc8   : > { %v999_v21 = vsel %vm987_vm2, %v966_v7, %v695_v5  ;;  %v984_v7 = vsel %vm954_vm3, %v1973_v58, %v2199_v31 }
  0xcc   : > { %786 = vrot.lane.b32.xlu2 %v2019_v3, %s1788_s26  ;;  %930 = vrot.lane.b32.xlu1 %v2107_v11, %s1792_s30 }
  0xcd   : > { %922 = vrot.lane.b32.xlu0 %v2089_v60, %s1792_s30 }
  0xce   : > { %v728_v61 = vpop.permute.xlu2 %727  ;;  %v703_v46 = vpop.permute.xlu1 %702 }
  0xcf   : > { %v2290_v16 = vsel %vm1020_vm4, %v995_v38, %v728_v61  ;;  %v1007_v3 = vsel %vm987_vm2, %v974_v8, %v703_v46  ;;  %v701_v23 = vpop.permute.xlu0 %700  ;;  %v980_v38 = vsel %vm954_vm3, %v2006_v43, %v628_v39  ;;  %v986_v39 = vsel %vm954_vm3, %v2031_v22, %v634_v17 }
  0xd0   : > { %v2297_v35 = vsel %vm987_vm2, %v972_v50, %v701_v23 }
  0xd4   : > { %829 = vrot.lane.b32.xlu2 %v2168_v4, %s1790_s28  ;;  %821 = vrot.lane.b32.xlu1 %v2125_v62, %s1790_s28 }
  0xd5   : > { %794 = vrot.lane.b32.xlu0 %v2044_v53, %s1788_s26 }
  0xd6   : > { %v734_v1 = vpop.permute.xlu2 %733  ;;  %v709_v40 = vpop.permute.xlu1 %708 }
  0xd7   : > { %v2308_v25 = vsel %vm1020_vm4, %v1001_v34, %v734_v1  ;;  %v2314_v4 = vsel %vm987_vm2, %v980_v38, %v709_v40  ;;  %v707_v9 = vpop.permute.xlu0 %706 }
  0xd8   : > { %v1011_v62 = vsel %vm987_vm2, %v978_v28, %v707_v9 }
  0xdc   : > { %905 = vrot.lane.b32.xlu2 %v2011_v51, %s1791_s29  ;;  %866 = vrot.lane.b32.xlu1 %v2031_v22, %s1789_s27 }
  0xdd   : > { %858 = vrot.lane.b32.xlu0 %v1939_v27, %s1789_s27 }
  0xde   : > { %v740_v53 = vpop.permute.xlu2 %739  ;;  %v715_v29 = vpop.permute.xlu1 %714 }
  0xdf   : > { %v2326_v37 = vsel %vm1020_vm4, %v1007_v3, %v740_v53  ;;  %v1019_v34 = vsel %vm987_vm2, %v986_v39, %v715_v29  ;;  %v713_v5 = vpop.permute.xlu0 %712  ;;  %v1715_v53 = vld [vmem:[%s2748_s1 + $0x8] sm:$0xff]  ;;  %v759_v39 = vshll.u32 %v2194_v24, 16 }
  0xe0   : > { %v1017_v61 = vsel %vm987_vm2, %v984_v7, %v713_v5  ;;  %v757_v5 = vshrl.u32 %v2194_v24, 16 }
  0xe4   : > { %948 = vrot.lane.b32.xlu2 %v2165_v63, %s1792_s30  ;;  %940 = vrot.lane.b32.xlu1 %v2152_v18, %s1792_s30 }
  0xe5   : > { %913 = vrot.lane.b32.xlu0 %v2069_v32, %s1791_s29 }
  0xe6   : > { %v2339_v27 = vpop.permute.xlu2 %745  ;;  %v726_v17 = vpop.permute.xlu1 %725 }
  0xe7   : > { %v2342_v22 = vsel %vm1020_vm4, %v993_v14, %v726_v17  ;;  %v724_v58 = vpop.permute.xlu0 %723  ;;  %v761_v17 = vrot.slane %v759_v39, 1 }
  0xe8   : > { %v2346_v31 = vsel %vm1020_vm4, %v2210_v42, %v724_v58 }
  0xec   : > { %805 = vrot.lane.b32.xlu2 %v2089_v60, %s1790_s28  ;;  %778 = vrot.lane.b32.xlu1 %v1984_v13, %s1788_s26 }
  0xed   : > { %770 = vrot.lane.b32.xlu0 %v1899_v47, %s1788_s26 }
  0xee   : > { %v752_v8 = vpop.permute.xlu2 %751  ;;  %v732_v14 = vpop.permute.xlu1 %731 }
  0xef   : > { %v2355_v46 = vsel %vm1020_vm4, %v1019_v34, %v752_v8  ;;  %v2358_v50 = vsel %vm1020_vm4, %v999_v21, %v732_v14  ;;  %v730_v3 = vpop.permute.xlu0 %729  ;;  %v762_v8 = vor.u32 %v761_v17, %v757_v5  ;;  %v281_v5 = vld [vmem:[%s1842_s22 + $0xd4] sm:$0x1] }
  0xf0   : > { %v2362_v42 = vsel %vm1020_vm4, %v2221_v19, %v730_v3  ;;  %v1222_v19 = vld [vmem:[%s2748_s1 + $0x10] sm:$0x3] }
  0xf4   : > { %850 = vrot.lane.b32.xlu2 %v1912_v59, %s1789_s27  ;;  %842 = vrot.lane.b32.xlu1 %v1879_v30, %s1789_s27  ;;  %v1232_v59 = vunpack.c.l.b16 %v1222_v19 }
  0xf5   : > { %813 = vrot.lane.b32.xlu0 %v2107_v11, %s1790_s28 }
  0xf6   : > { %v2370_v47 = vpop.permute.xlu2 %792  ;;  %v2372_v13 = vpop.permute.xlu1 %737  ;;  %v1235_v30 = vpack.c.b16 %v1232_v59, %v1232_v59 }
  0xf7   : > { %v736_v60 = vpop.permute.xlu0 %735 }
  0xf8   : > { %v2376_v21 = vsel %vm1020_vm4, %v2232_v36, %v736_v60  ;;  %v278_v36 = vld [vmem:[%s1842_s22 + $0xc8] sm:$0x1]  ;;  %v1273_v23 = vsel %vm1271_vm5, %v1235_v30, 0 }
  0xf9   : > { %1717 = vmatpush.bf16.msra.mxu2 %v1273_v23  ;;  %1718 = vmatpush.bf16.msra.mxu3 %v1273_v23  ;;  %v754_v9 = vunpack.c.l.b16 %v278_v36 }
  0xfa   : > { %1280 = vmatpush.bf16.msra.mxu0 %v1273_v23  ;;  %1716 = vmatpush.bf16.msra.mxu1 %v1273_v23 }
  0xfc   : > { %924 = vrot.lane.b32.xlu2 %v2086_v48, %s1792_s30  ;;  %897 = vrot.lane.b32.xlu1 %v1979_v6, %s1791_s29 }
  0xfd   : > { %889 = vrot.lane.b32.xlu0 %v1931_v15, %s1791_s29  ;;  %1720 = vmatpush.bf16.msra.mxu2 %v1715_v53 }
  0xfe   : > { %v2387_v11 = vpop.permute.xlu2 %856  ;;  %v744_v1 = vpop.permute.xlu1 %743  ;;  %1721 = vmatpush.bf16.msra.mxu3 %v1715_v53  ;;  %1281 = vmatpush.bf16.msra.mxu0 %v1715_v53 }
  0xff   : > { %v2391_v38 = vsel %vm1020_vm4, %v1011_v62, %v744_v1  ;;  %v742_v40 = vpop.permute.xlu0 %741  ;;  %v755_v62 = vpack.c.b16 %v754_v9, %v754_v9  ;;  %1719 = vmatpush.bf16.msra.mxu1 %v1715_v53  ;;  %v1046_v1 = vsel %vm1020_vm4, %v2314_v4, %v2339_v27 }
 0x100   : > { %v2395_v28 = vsel %vm1020_vm4, %v2245_v26, %v742_v40  ;;  %v1714_v26 = vld [vmem:[%s2748_s1] sm:$0xff]  ;;  %v1079_v40 = vsel %vm1053_vm6, %v1046_v1, %v2370_v47 }
 0x101   : > { %1723 = vmatpush.bf16.msra.mxu2 %v1714_v26  ;;  %v764_v58 = vshll.u32 %v755_v62, 16 }
 0x102   : > { %1724 = vmatpush.bf16.msra.mxu3 %v1714_v26  ;;  %1282 = vmatpush.bf16.msra.mxu0 %v1714_v26 }
 0x103   : > { %1722 = vmatpush.bf16.msra.mxu1 %v1714_v26 }
 0x104   : > { %796 = vrot.lane.b32.xlu2 %v2069_v32, %s1788_s26  ;;  %788 = vrot.lane.b32.xlu1 %v2011_v51, %s1788_s26 }
 0x105   : > { %932 = vrot.lane.b32.xlu0 %v2104_v10, %s1792_s30 }
 0x106   : > { %v912_v29 = vpop.permute.xlu2 %911  ;;  %v750_v7 = vpop.permute.xlu1 %749 }
 0x107   : > { %v2411_v32 = vsel %vm1020_vm4, %v1017_v61, %v750_v7  ;;  %v748_v34 = vpop.permute.xlu0 %747  ;;  %v766_v61 = vrot.slane %v764_v58, 1  ;;  %v873_v58 = vunpack.c.l.b16 %v281_v5  ;;  %v2761_v5 = vld [vmem:[#allocation2_spill] sm:$0xff] }
 0x108   : > { %v2415_v51 = vsel %vm1020_vm4, %v2259_v56, %v748_v34 }
 0x109   : > { %v2425_v60 = vsel %vm410_vm0, %v762_v8, %v766_v61 }
 0x10c   : > { %860 = vrot.lane.b32.xlu2 %v2006_v43, %s1789_s27  ;;  %831 = vrot.lane.b32.xlu1 %v2165_v63, %s1790_s28  ;;  %v800_v63 = vrot.slane %v2194_v24, 1 }
 0x10d   : > { %823 = vrot.lane.b32.xlu0 %v2152_v18, %s1790_s28  ;;  %v801_v18 = vrot.slane %v755_v62, 1 }
 0x10e   : > { %v777_v14 = vpop.permute.xlu2 %776  ;;  %v785_v3 = vpop.permute.xlu1 %784 }
 0x10f   : > { %v769_v56 = vpop.permute.xlu0 %768  ;;  %v2437_v30 = vsel %vm635_vm1, %v800_v63, %v801_v18 }
 0x110   : > { %v1055_v8 = vsel %vm1053_vm6, %v2274_v2, %v769_v56 }
 0x114   : > { %915 = vrot.lane.b32.xlu2 %v2425_v60, %s1791_s29  ;;  %907 = vrot.lane.b32.xlu1 %v2050_v57, %s1791_s29 }
 0x115   : > { %868 = vrot.lane.b32.xlu0 %v2194_v24, %s1789_s27 }
 0x116   : > { %v2433_v43 = vpop.permute.xlu2 %840  ;;  %v828_v19 = vpop.permute.xlu1 %827 }
 0x117   : > { %v820_v59 = vpop.permute.xlu0 %819  ;;  %v1112_v53 = vsel %vm1086_vm7, %v1079_v40, %v828_v19 }
 0x11c   : > { %772 = vrot.lane.b32.xlu2 %v1931_v15, %s1788_s26  ;;  %950 = vrot.lane.b32.xlu1 %v2437_v30, %s1792_s30  ;;  %v1038_v15 = vsel %vm1020_vm4, %v2297_v35, %v2372_v13 }
 0x11d   : > { %942 = vrot.lane.b32.xlu0 %v2149_v49, %s1792_s30  ;;  %v1071_v9 = vsel %vm1053_vm6, %v1038_v15, %v785_v3 }
 0x11e   : > { %v896_v36 = vpop.permute.xlu2 %895  ;;  %v904_v23 = vpop.permute.xlu1 %903  ;;  %v1104_v62 = vsel %vm1086_vm7, %v1071_v9, %v820_v59 }
 0x11f   : > { %v865_v24 = vpop.permute.xlu0 %864  ;;  %v1137_v4 = vsel %vm1119_vm8, %v1104_v62, %v2387_v11 }
 0x120   : > { %v1145_v39 = vsel %vm1119_vm8, %v1112_v53, %v865_v24  ;;  %v1170_v13 = vsel %vm1152_vm9, %v1137_v4, %v904_v23 }
 0x121   : > { %v1178_v47 = vsel %vm1152_vm9, %v1145_v39, %v912_v29 }
 0x124   : > { %815 = vrot.lane.b32.xlu2 %v2104_v10, %s1790_s28  ;;  %807 = vrot.lane.b32.xlu1 %v2086_v48, %s1790_s28 }
 0x125   : > { %780 = vrot.lane.b32.xlu0 %v1979_v6, %s1788_s26 }
 0x126   : > { %v2463_v35 = vpop.permute.xlu2 %786  ;;  %v947_v27 = vpop.permute.xlu1 %946 }
 0x127   : > { %v939_v26 = vpop.permute.xlu0 %938  ;;  %v1211_v10 = vsel %vm1185_vm10, %v1178_v47, %v947_v27 }
 0x128   : > { %v1203_v48 = vsel %vm1185_vm10, %v1170_v13, %v939_v26  ;;  %1689 = vmatmul.msk.bf16.vlgmr.msra.gmra.mxu3 %vm1238_vm11, %v1211_v10 }
 0x129   : > { %1685 = vmatmul.msk.bf16.vlgmr.msra.gmra.mxu2 %vm1238_vm11, %v1203_v48 }
 0x12c   : > { %891 = vrot.lane.b32.xlu2 %v1889_v41, %s1791_s29  ;;  %852 = vrot.lane.b32.xlu1 %v1893_v45, %s1789_s27  ;;  %v1063_v45 = vsel %vm1053_vm6, %v2362_v42, %v777_v14  ;;  %v874_v14 = vpack.c.b16 %v873_v58, %v873_v58  ;;  %v2762_v58 = vld [vmem:[#allocation5_spill] sm:$0xff] }
 0x12d   : > { %844 = vrot.lane.b32.xlu0 %v1845_v0, %s1789_s27  ;;  %v1713_v0 = vld [vmem:[%s1842_s22 + $0xcc] sm:$0xff] }
 0x12e   : > { %v830_v6 = vpop.permute.xlu2 %829  ;;  %v812_v11 = vpop.permute.xlu1 %811  ;;  %v878_v18 = vshll.u32 %v1713_v0, 16  ;;  %v883_v1 = vshll.u32 %v874_v14, 16  ;;  %v920_v39 = vrot.slane %v874_v14, 1 }
 0x12f   : > { %v804_v29 = vpop.permute.xlu0 %803  ;;  %v1096_v61 = vsel %vm1086_vm7, %v1063_v45, %v812_v11 }
 0x130   : > { %v1088_v3 = vsel %vm1086_vm7, %v1055_v8, %v804_v29  ;;  %v1760_v29 = vld [vmem:[%s1842_s22 + $0x3c] sm:$0xff]  ;;  %s2615_s22 = scalar_lea.vmem %s2751_s4, %s1695_s19 }
 0x131   : > { %v1121_v2 = vsel %vm1119_vm8, %v1088_v3, %v2433_v43 }
 0x134   : > { %934 = vrot.lane.b32.xlu2 %v2131_v33, %s1792_s30  ;;  %926 = vrot.lane.b32.xlu1 %v2083_v44, %s1792_s30 }
 0x135   : > { %899 = vrot.lane.b32.xlu0 %v1969_v54, %s1791_s29 }
 0x136   : > { %v906_v7 = vpop.permute.xlu2 %905  ;;  %v888_v34 = vpop.permute.xlu1 %887 }
 0x137   : > { %v849_v17 = vpop.permute.xlu0 %848  ;;  %v1154_v59 = vsel %vm1152_vm9, %v1121_v2, %v888_v34  ;;  %v2760_v34 = vld [vmem:[#allocation3_spill] sm:$0xff] }
 0x138   : > { %v1129_v63 = vsel %vm1119_vm8, %v1096_v61, %v849_v17 }
 0x139   : > { %v1162_v19 = vsel %vm1152_vm9, %v1129_v63, %v896_v36  ;;  %v885_v36 = vrot.slane %v883_v1, 1 }
 0x13c   : > { %825 = vrot.lane.b32.xlu2 %v2149_v49, %s1790_s28  ;;  %798 = vrot.lane.b32.xlu1 %v2425_v60, %s1788_s26  ;;  %v880_v60 = vrot.slane %v878_v18, 1 }
 0x13d   : > { %790 = vrot.lane.b32.xlu0 %v2050_v57, %s1788_s26  ;;  %v876_v57 = vshrl.u32 %v1713_v0, 16 }
 0x13e   : > { %v949_v42 = vpop.permute.xlu2 %948  ;;  %v931_v56 = vpop.permute.xlu1 %930 }
 0x13f   : > { %v923_v23 = vpop.permute.xlu0 %922  ;;  %v1195_v49 = vsel %vm1185_vm10, %v1162_v19, %v931_v56  ;;  %v881_v43 = vor.u32 %v880_v60, %v876_v57 }
 0x140   : > { %v1187_v24 = vsel %vm1185_vm10, %v1154_v59, %v923_v23  ;;  %1681 = vmatmul.msk.bf16.vlgmr.msra.gmra.mxu1 %vm1238_vm11, %v1195_v49 }
 0x141   : > { %1677 = vmatmul.msk.bf16.vlgmr.msra.gmra.mxu0 %vm1238_vm11, %v1187_v24  ;;  %v886_v53 = vsel %vm410_vm0, %v881_v43, %v885_v36 }
 0x144   : > { %870 = vrot.lane.b32.xlu2 %v1713_v0, %s1789_s27  ;;  %862 = vrot.lane.b32.xlu1 %v1989_v20, %s1789_s27  ;;  %v919_v20 = vrot.slane %v1713_v0, 1 }
 0x145   : > { %833 = vrot.lane.b32.xlu0 %v2437_v30, %s1790_s28  ;;  %v1073_v30 = vsel %vm1053_vm6, %v2326_v37, %v2463_v35 }
 0x146   : > { %v822_v40 = vpop.permute.xlu1 %821  ;;  %v806_v15 = vpop.permute.xlu2 %805  ;;  %v921_v13 = vsel %vm635_vm1, %v919_v20, %v920_v39 }
 0x147   : > { %v795_v9 = vpop.permute.xlu0 %794  ;;  %v1106_v47 = vsel %vm1086_vm7, %v1073_v30, %v822_v40 }
 0x14c   : > { %944 = vrot.lane.b32.xlu2 %v2146_v12, %s1792_s30  ;;  %917 = vrot.lane.b32.xlu1 %v886_v53, %s1791_s29  ;;  %v1081_v12 = vsel %vm1053_vm6, %v2415_v51, %v795_v9 }
 0x14d   : > { %909 = vrot.lane.b32.xlu0 %v2047_v55, %s1791_s29  ;;  %v1114_v55 = vsel %vm1086_vm7, %v1081_v12, %v830_v6 }
 0x14e   : > { %v867_v62 = vpop.permute.xlu1 %866  ;;  %v851_v27 = vpop.permute.xlu2 %850 }
 0x14f   : > { %v859_v4 = vpop.permute.xlu0 %858  ;;  %v1147_v10 = vsel %vm1119_vm8, %v1114_v55, %v867_v62 }
 0x150   : > { %v1139_v26 = vsel %vm1119_vm8, %v1106_v47, %v859_v4 }
 0x151   : > { %v1172_v35 = vsel %vm1152_vm9, %v1139_v26, %v906_v7 }
 0x154   : > { %782 = vrot.lane.b32.xlu2 %v1969_v54, %s1788_s26  ;;  %774 = vrot.lane.b32.xlu1 %v1889_v41, %s1788_s26 }
 0x155   : > { %952 = vrot.lane.b32.xlu0 %v921_v13, %s1792_s30 }
 0x156   : > { %v941_v37 = vpop.permute.xlu1 %940  ;;  %v925_v41 = vpop.permute.xlu2 %924 }
 0x157   : > { %v914_v48 = vpop.permute.xlu0 %913  ;;  %v1205_v51 = vsel %vm1185_vm10, %v1172_v35, %v941_v37 }
 0x158   : > { %v1180_v11 = vsel %vm1152_vm9, %v1147_v10, %v914_v48  ;;  %1686 = vmatmul.msk.bf16.gmra.mxu2 %vm1238_vm11, %v1205_v51 }
 0x159   : > { %v1213_v54 = vsel %vm1185_vm10, %v1180_v11, %v949_v42 }
 0x15a   : > { %1690 = vmatmul.msk.bf16.gmra.mxu3 %vm1238_vm11, %v1213_v54 }
 0x15c   : > { %846 = vrot.lane.b32.xlu2 %v1760_v29, %s1789_s27  ;;  %817 = vrot.lane.b32.xlu1 %v2131_v33, %s1790_s28 }
 0x15d   : > { %809 = vrot.lane.b32.xlu0 %v2083_v44, %s1790_s28  ;;  %v2763_v44 = vld [vmem:[#allocation4_spill] sm:$0xff] }
 0x15e   : > { %v779_v6 = vpop.permute.xlu1 %778  ;;  %v797_v17 = vpop.permute.xlu2 %796 }
 0x15f   : > { %v771_v7 = vpop.permute.xlu0 %770  ;;  %v1083_v43 = vsel %vm1053_vm6, %v2411_v32, %v797_v17 }
 0x160   : > { %v1057_v33 = vsel %vm1053_vm6, %v2346_v31, %v771_v7  ;;  %v1065_v31 = vsel %vm1053_vm6, %v2358_v50, %v779_v6 }
 0x161   : > { %v1090_v8 = vsel %vm1086_vm7, %v1057_v33, %v806_v15 }
 0x164   : > { %901 = vrot.lane.b32.xlu2 %v2760_v34, %s1791_s29  ;;  %893 = vrot.lane.b32.xlu1 %v2761_v5, %s1791_s29  ;;  %v2606_v34 = vld [vmem:[%s2750_s3] ss:$0 sm:$0xff] }
 0x165   : > { %854 = vrot.lane.b32.xlu0 %v1965_v52, %s1789_s27 }
 0x166   : > { %v843_v45 = vpop.permute.xlu1 %842  ;;  %v861_v3 = vpop.permute.xlu2 %860 }
 0x167   : > { %v814_v0 = vpop.permute.xlu0 %813  ;;  %v1123_v63 = vsel %vm1119_vm8, %v1090_v8, %v843_v45 }
 0x168   : > { %v1098_v18 = vsel %vm1086_vm7, %v1065_v31, %v814_v0 }
 0x169   : > { %v1131_v2 = vsel %vm1119_vm8, %v1098_v18, %v851_v27 }
 0x16c   : > { %936 = vrot.lane.b32.xlu1 %v2762_v58, %s1792_s30 }
 0x16d   : > { %928 = vrot.lane.b32.xlu0 %v2763_v44, %s1792_s30 }
 0x16e   : > { %v898_v61 = vpop.permute.xlu1 %897  ;;  %v916_v49 = vpop.permute.xlu2 %915 }
 0x16f   : > { %v890_v42 = vpop.permute.xlu0 %889  ;;  %v1164_v19 = vsel %vm1152_vm9, %v1131_v2, %v898_v61 }
 0x170   : > { %v1156_v52 = vsel %vm1152_vm9, %v1123_v63, %v890_v42 }
 0x171   : > { %v1189_v14 = vsel %vm1185_vm10, %v1156_v52, %v925_v41 }
 0x172   : > { %1678 = vmatmul.msk.bf16.gmra.mxu0 %vm1238_vm11, %v1189_v14 }
 0x176   : > { %v789_v56 = vpop.permute.xlu1 %788  ;;  %v773_v60 = vpop.permute.xlu2 %772 }
 0x177   : > { %v933_v59 = vpop.permute.xlu0 %932  ;;  %v1075_v36 = vsel %vm1053_vm6, %v2395_v28, %v789_v56  ;;  %v1059_v55 = vsel %vm1053_vm6, %v2342_v22, %v773_v60 }
 0x178   : > { %v1197_v23 = vsel %vm1185_vm10, %v1164_v19, %v933_v59 }
 0x179   : > { %1682 = vmatmul.msk.bf16.gmra.mxu1 %vm1238_vm11, %v1197_v23 }
 0x17e   : > { %v832_v24 = vpop.permute.xlu1 %831  ;;  %v816_v53 = vpop.permute.xlu2 %815 }
 0x17f   : > { %v824_v57 = vpop.permute.xlu0 %823  ;;  %v1116_v40 = vsel %vm1086_vm7, %v1083_v43, %v832_v24 }
 0x180   : > { %v1108_v15 = vsel %vm1086_vm7, %v1075_v36, %v824_v57 }
 0x181   : > { %v1141_v62 = vsel %vm1119_vm8, %v1108_v15, %v861_v3 }
 0x186   : > { %v908_v1 = vpop.permute.xlu1 %907  ;;  %v892_v47 = vpop.permute.xlu2 %891 }
 0x187   : > { %v869_v50 = vpop.permute.xlu0 %868  ;;  %v1174_v4 = vsel %vm1152_vm9, %v1141_v62, %v908_v1 }
 0x188   : > { %v1149_v9 = vsel %vm1119_vm8, %v1116_v40, %v869_v50 }
 0x189   : > { %v1182_v39 = vsel %vm1152_vm9, %v1149_v9, %v916_v49 }
 0x18e   : > { %v951_v20 = vpop.permute.xlu1 %950  ;;  %v935_v37 = vpop.permute.xlu2 %934 }
 0x18f   : > { %v943_v30 = vpop.permute.xlu0 %942  ;;  %v1215_v32 = vsel %vm1185_vm10, %v1182_v39, %v951_v20 }
 0x190   : > { %v1207_v27 = vsel %vm1185_vm10, %v1174_v4, %v943_v30  ;;  %1691 = vmatmul.msk.bf16.gmra.mxu3 %vm1238_vm11, %v1215_v32 }
 0x191   : > { %1687 = vmatmul.msk.bf16.gmra.mxu2 %vm1238_vm11, %v1207_v27 }
 0x196   : > { %v808_v28 = vpop.permute.xlu1 %807  ;;  %v826_v5 = vpop.permute.xlu2 %825 }
 0x197   : > { %v781_v13 = vpop.permute.xlu0 %780  ;;  %v1092_v35 = vsel %vm1086_vm7, %v1059_v55, %v808_v28 }
 0x198   : > { %v1067_v10 = vsel %vm1053_vm6, %v2308_v25, %v781_v13  ;;  %v2599_v25 = vld [vmem:[%s2749_s2] ss:$0 sm:$0xff] }
 0x199   : > { %v1100_v51 = vsel %vm1086_vm7, %v1067_v10, %v816_v53 }
 0x19e   : > { %v853_v12 = vpop.permute.xlu1 %852  ;;  %v871_v31 = vpop.permute.xlu2 %870 }
 0x19f   : > { %v845_v26 = vpop.permute.xlu0 %844  ;;  %v1133_v41 = vsel %vm1119_vm8, %v1100_v51, %v853_v12 }
 0x1a0   : > { %v1125_v48 = vsel %vm1119_vm8, %v1092_v35, %v845_v26 }
 0x1a1   : > { %v1158_v54 = vsel %vm1152_vm9, %v1125_v48, %v892_v47 }
 0x1a6   : > { %v927_v11 = vpop.permute.xlu1 %926  ;;  %v945_v36 = vpop.permute.xlu2 %944 }
 0x1a7   : > { %v900_v29 = vpop.permute.xlu0 %899  ;;  %v1191_v6 = vsel %vm1185_vm10, %v1158_v54, %v927_v11 }
 0x1a8   : > { %v1166_v22 = vsel %vm1152_vm9, %v1133_v41, %v900_v29  ;;  %1679 = vmatmul.msk.bf16.gmra.mxu0 %vm1238_vm11, %v1191_v6 }
 0x1a9   : > { %v1199_v7 = vsel %vm1185_vm10, %v1166_v22, %v935_v37 }
 0x1aa   : > { %1683 = vmatmul.msk.bf16.gmra.mxu1 %vm1238_vm11, %v1199_v7 }
 0x1ab   : > { %v1344_v17 = vpop.f32.mrf.mxu3 }
 0x1ac   : > { %v1324_v45 = vpop.f32.mrf.mxu2  ;;  %v1392_v0 = vmul.f32 %v2599_v25, %v1344_v17 }
 0x1ad   : > { %v1384_v33 = vmul.f32 %v2599_v25, %v1324_v45 }
 0x1ae   : > { %v1428_v58 = vadd.f32 %v2606_v34, %v1392_v0  ;;  %v799_v44 = vpop.permute.xlu1 %798  ;;  %v783_v10 = vpop.permute.xlu2 %782 }
 0x1af   : > { %v1420_v8 = vadd.f32 %v2606_v34, %v1384_v33  ;;  %v791_v61 = vpop.permute.xlu0 %790  ;;  %v1085_v39 = vsel %vm1053_vm6, %v2355_v46, %v799_v44  ;;  %v1069_v7 = vsel %vm1053_vm6, %v2376_v21, %v783_v10 }
 0x1b0   : > { %v1460_v3 = vmax.f32 %v1428_v58, 0.0  ;;  %v1077_v24 = vsel %vm1053_vm6, %v2391_v38, %v791_v61 }
 0x1b1   : > { %v1452_v63 = vmax.f32 %v1420_v8, 0.0  ;;  %v1110_v60 = vsel %vm1086_vm7, %v1077_v24, %v826_v5 }
 0x1b2   : > { %1492 = vst [vmem:[%s2615_s22 + $0xc0] sm:$0xff] %v1460_v3 }
 0x1b3   : > { %1484 = vst [vmem:[%s2615_s22 + $0x80] sm:$0xff] %v1452_v63  ;;  %v1346_v42 = vpop.f32.mrf.mxu3 }
 0x1b4   : > { %v1326_v52 = vpop.f32.mrf.mxu2  ;;  %v1393_v14 = vmul.f32 %v2599_v25, %v1346_v42 }
 0x1b5   : > { %v1385_v18 = vmul.f32 %v2599_v25, %v1326_v52 }
 0x1b6   : > { %v1429_v2 = vadd.f32 %v2606_v34, %v1393_v14  ;;  %v863_v56 = vpop.permute.xlu1 %862  ;;  %v847_v29 = vpop.permute.xlu2 %846 }
 0x1b7   : > { %v1421_v19 = vadd.f32 %v2606_v34, %v1385_v18  ;;  %v834_v59 = vpop.permute.xlu0 %833  ;;  %v1143_v40 = vsel %vm1119_vm8, %v1110_v60, %v863_v56 }
 0x1b8   : > { %v1461_v23 = vmax.f32 %v1429_v2, 0.0  ;;  %v1118_v30 = vsel %vm1086_vm7, %v1085_v39, %v834_v59 }
 0x1b9   : > { %v1453_v49 = vmax.f32 %v1421_v19, 0.0  ;;  %v1151_v28 = vsel %vm1119_vm8, %v1118_v30, %v871_v31 }
 0x1ba   : > { %1493 = vst [vmem:[%s2615_s22 + $0xc8] sm:$0xff] %v1461_v23 }
 0x1bb   : > { %1485 = vst [vmem:[%s2615_s22 + $0x88] sm:$0xff] %v1453_v49 }
 0x1bd   : > { %v1304_v57 = vpop.f32.mrf.mxu1 }
 0x1be   : > { %v1284_v1 = vpop.f32.mrf.mxu0  ;;  %v1376_v50 = vmul.f32 %v2599_v25, %v1304_v57  ;;  %v918_v43 = vpop.permute.xlu1 %917 }
 0x1bf   : > { %v1368_v15 = vmul.f32 %v2599_v25, %v1284_v1  ;;  %v910_v9 = vpop.permute.xlu0 %909  ;;  %v1184_v26 = vsel %vm1152_vm9, %v1151_v28, %v918_v43  ;;  %v902_v33 = vpop.permute.xlu2 %901 }
 0x1c0   : > { %v1412_v53 = vadd.f32 %v2606_v34, %v1376_v50  ;;  %v1176_v38 = vsel %vm1152_vm9, %v1143_v40, %v910_v9 }
 0x1c1   : > { %v1404_v62 = vadd.f32 %v2606_v34, %v1368_v15  ;;  %v1209_v20 = vsel %vm1185_vm10, %v1176_v38, %v945_v36 }
 0x1c2   : > { %v1444_v4 = vmax.f32 %v1412_v53, 0.0  ;;  %1688 = vmatmul.msk.bf16.gmra.mxu2 %vm1238_vm11, %v1209_v20 }
 0x1c3   : > { %v1436_v32 = vmax.f32 %v1404_v62, 0.0 }
 0x1c4   : > { %1476 = vst [vmem:[%s2615_s22 + $0x40] sm:$0xff] %v1444_v4 }
 0x1c5   : > { %1468 = vst [vmem:[%s2615_s22] sm:$0xff] %v1436_v32  ;;  %v1306_v27 = vpop.f32.mrf.mxu1 }
 0x1c6   : > { %v1286_v47 = vpop.f32.mrf.mxu0  ;;  %v1377_v13 = vmul.f32 %v2599_v25, %v1306_v27  ;;  %v775_v12 = vpop.permute.xlu1 %774 }
 0x1c7   : > { %v1369_v46 = vmul.f32 %v2599_v25, %v1286_v47  ;;  %v953_v55 = vpop.permute.xlu0 %952  ;;  %v1061_v5 = vsel %vm1053_vm6, %v2290_v16, %v775_v12 }
 0x1c8   : > { %v1413_v37 = vadd.f32 %v2606_v34, %v1377_v13  ;;  %v1217_v35 = vsel %vm1185_vm10, %v1184_v26, %v953_v55 }
 0x1c9   : > { %v1405_v48 = vadd.f32 %v2606_v34, %v1369_v46  ;;  %1692 = vmatmul.msk.bf16.gmra.mxu3 %vm1238_vm11, %v1217_v35 }
 0x1ca   : > { %v1445_v51 = vmax.f32 %v1413_v37, 0.0 }
 0x1cb   : > { %v1437_v11 = vmax.f32 %v1405_v48, 0.0 }
 0x1cc   : > { %1477 = vst [vmem:[%s2615_s22 + $0x48] sm:$0xff] %v1445_v51 }
 0x1cd   : > { %1469 = vst [vmem:[%s2615_s22 + $0x8] sm:$0xff] %v1437_v11 }
 0x1ce   : > { %v818_v54 = vpop.permute.xlu1 %817 }
 0x1cf   : > { %v810_v41 = vpop.permute.xlu0 %809  ;;  %v1102_v17 = vsel %vm1086_vm7, %v1069_v7, %v818_v54 }
 0x1d0   : > { %v1094_v45 = vsel %vm1086_vm7, %v1061_v5, %v810_v41 }
 0x1d1   : > { %v1127_v61 = vsel %vm1119_vm8, %v1094_v45, %v847_v29 }
 0x1d6   : > { %v894_v6 = vpop.permute.xlu1 %893 }
 0x1d7   : > { %v855_v22 = vpop.permute.xlu0 %854  ;;  %v1160_v42 = vsel %vm1152_vm9, %v1127_v61, %v894_v6 }
 0x1d8   : > { %v1135_v0 = vsel %vm1119_vm8, %v1102_v17, %v855_v22 }
 0x1d9   : > { %v1168_v21 = vsel %vm1152_vm9, %v1135_v0, %v902_v33 }
 0x1db   : > { %v1329_v58 = vpop.f32.mrf.mxu2 }
 0x1dc   : > { %v1386_v44 = vmul.f32 %v2599_v25, %v1329_v58 }
 0x1dd   : > { %v1349_v8 = vpop.f32.mrf.mxu3 }
 0x1de   : > { %v1422_v3 = vadd.f32 %v2606_v34, %v1386_v44  ;;  %v1394_v16 = vmul.f32 %v2599_v25, %v1349_v8  ;;  %v937_v63 = vpop.permute.xlu1 %936 }
 0x1df   : > { %v929_v52 = vpop.permute.xlu0 %928  ;;  %v1201_v14 = vsel %vm1185_vm10, %v1168_v21, %v937_v63 }
 0x1e0   : > { %v1454_v31 = vmax.f32 %v1422_v3, 0.0  ;;  %v1430_v18 = vadd.f32 %v2606_v34, %v1394_v16  ;;  %v1193_v2 = vsel %vm1185_vm10, %v1160_v42, %v929_v52  ;;  %1684 = vmatmul.msk.bf16.gmra.mxu1 %vm1238_vm11, %v1201_v14 }
 0x1e1   : > { %1680 = vmatmul.msk.bf16.gmra.mxu0 %vm1238_vm11, %v1193_v2 }
 0x1e2   : > { %1486 = vst [vmem:[%s2615_s22 + $0x90] sm:$0xff] %v1454_v31  ;;  %v1462_v56 = vmax.f32 %v1430_v18, 0.0 }
 0x1e3   : > { %v1331_v19 = vpop.f32.mrf.mxu2 }
 0x1e4   : > { %1494 = vst [vmem:[%s2615_s22 + $0xd0] sm:$0xff] %v1462_v56  ;;  %v1387_v59 = vmul.f32 %v2599_v25, %v1331_v19 }
 0x1e5   : > { %v1351_v23 = vpop.f32.mrf.mxu3 }
 0x1e6   : > { %v1423_v49 = vadd.f32 %v2606_v34, %v1387_v59  ;;  %v1395_v24 = vmul.f32 %v2599_v25, %v1351_v23 }
 0x1e8   : > { %v1455_v57 = vmax.f32 %v1423_v49, 0.0  ;;  %v1431_v60 = vadd.f32 %v2606_v34, %v1395_v24 }
 0x1ea   : > { %1487 = vst [vmem:[%s2615_s22 + $0x98] sm:$0xff] %v1455_v57  ;;  %v1463_v1 = vmax.f32 %v1431_v60, 0.0 }
 0x1ec   : > { %1495 = vst [vmem:[%s2615_s22 + $0xd8] sm:$0xff] %v1463_v1 }
 0x1ef   : > { %v1289_v50 = vpop.f32.mrf.mxu0 }
 0x1f0   : > { %v1370_v43 = vmul.f32 %v2599_v25, %v1289_v50 }
 0x1f2   : > { %v1406_v36 = vadd.f32 %v2606_v34, %v1370_v43 }
 0x1f4   : > { %v1438_v40 = vmax.f32 %v1406_v36, 0.0 }
 0x1f6   : > { %1470 = vst [vmem:[%s2615_s22 + $0x10] sm:$0xff] %v1438_v40  ;;  %v1309_v15 = vpop.f32.mrf.mxu1 }
 0x1f7   : > { %v1378_v9 = vmul.f32 %v2599_v25, %v1309_v15  ;;  %v1291_v53 = vpop.f32.mrf.mxu0 }
 0x1f8   : > { %v1371_v38 = vmul.f32 %v2599_v25, %v1291_v53 }
 0x1f9   : > { %v1414_v62 = vadd.f32 %v2606_v34, %v1378_v9 }
 0x1fa   : > { %v1407_v20 = vadd.f32 %v2606_v34, %v1371_v38 }
 0x1fb   : > { %v1446_v39 = vmax.f32 %v1414_v62, 0.0 }
 0x1fc   : > { %v1439_v4 = vmax.f32 %v1407_v20, 0.0 }
 0x1fd   : > { %1478 = vst [vmem:[%s2615_s22 + $0x50] sm:$0xff] %v1446_v39 }
 0x1fe   : > { %1471 = vst [vmem:[%s2615_s22 + $0x18] sm:$0xff] %v1439_v4  ;;  %v1311_v30 = vpop.f32.mrf.mxu1 }
 0x1ff   : > { %v1379_v32 = vmul.f32 %v2599_v25, %v1311_v30 }
 0x201   : > { %v1415_v27 = vadd.f32 %v2606_v34, %v1379_v32 }
 0x203   : > { %v1447_v28 = vmax.f32 %v1415_v27, 0.0 }
 0x205   : > { %1479 = vst [vmem:[%s2615_s22 + $0x58] sm:$0xff] %v1447_v28 }
 0x213   : > { %v1354_v47 = vpop.f32.mrf.mxu3 }
 0x214   : > { %v1334_v13 = vpop.f32.mrf.mxu2  ;;  %v1396_v12 = vmul.f32 %v2599_v25, %v1354_v47 }
 0x215   : > { %v1388_v26 = vmul.f32 %v2599_v25, %v1334_v13 }
 0x216   : > { %v1432_v46 = vadd.f32 %v2606_v34, %v1396_v12 }
 0x217   : > { %v1424_v55 = vadd.f32 %v2606_v34, %v1388_v26 }
 0x218   : > { %v1464_v37 = vmax.f32 %v1432_v46, 0.0 }
 0x219   : > { %v1456_v35 = vmax.f32 %v1424_v55, 0.0 }
 0x21a   : > { %1496 = vst [vmem:[%s2615_s22 + $0xe0] sm:$0xff] %v1464_v37 }
 0x21b   : > { %1488 = vst [vmem:[%s2615_s22 + $0xa0] sm:$0xff] %v1456_v35  ;;  %v1356_v10 = vpop.f32.mrf.mxu3 }
 0x21c   : > { %v1336_v48 = vpop.f32.mrf.mxu2  ;;  %v1397_v51 = vmul.f32 %v2599_v25, %v1356_v10 }
 0x21d   : > { %v1389_v11 = vmul.f32 %v2599_v25, %v1336_v48 }
 0x21e   : > { %v1433_v54 = vadd.f32 %v2606_v34, %v1397_v51 }
 0x21f   : > { %v1425_v41 = vadd.f32 %v2606_v34, %v1389_v11 }
 0x220   : > { %v1465_v29 = vmax.f32 %v1433_v54, 0.0 }
 0x221   : > { %v1457_v6 = vmax.f32 %v1425_v41, 0.0 }
 0x222   : > { %1497 = vst [vmem:[%s2615_s22 + $0xe8] sm:$0xff] %v1465_v29 }
 0x223   : > { %1489 = vst [vmem:[%s2615_s22 + $0xa8] sm:$0xff] %v1457_v6 }
 0x225   : > { %v1294_v22 = vpop.f32.mrf.mxu0 }
 0x226   : > { %v1372_v7 = vmul.f32 %v2599_v25, %v1294_v22 }
 0x227   : > { %v1314_v5 = vpop.f32.mrf.mxu1 }
 0x228   : > { %v1408_v17 = vadd.f32 %v2606_v34, %v1372_v7  ;;  %v1380_v45 = vmul.f32 %v2599_v25, %v1314_v5 }
 0x22a   : > { %v1440_v0 = vmax.f32 %v1408_v17, 0.0  ;;  %v1416_v33 = vadd.f32 %v2606_v34, %v1380_v45 }
 0x22c   : > { %1472 = vst [vmem:[%s2615_s22 + $0x20] sm:$0xff] %v1440_v0  ;;  %v1448_v58 = vmax.f32 %v1416_v33, 0.0 }
 0x22d   : > { %v1296_v44 = vpop.f32.mrf.mxu0 }
 0x22e   : > { %1480 = vst [vmem:[%s2615_s22 + $0x60] sm:$0xff] %v1448_v58  ;;  %v1373_v8 = vmul.f32 %v2599_v25, %v1296_v44 }
 0x22f   : > { %v1316_v61 = vpop.f32.mrf.mxu1 }
 0x230   : > { %v1409_v21 = vadd.f32 %v2606_v34, %v1373_v8  ;;  %v1381_v3 = vmul.f32 %v2599_v25, %v1316_v61 }
 0x232   : > { %v1441_v16 = vmax.f32 %v1409_v21, 0.0  ;;  %v1417_v63 = vadd.f32 %v2606_v34, %v1381_v3 }
 0x234   : > { %1473 = vst [vmem:[%s2615_s22 + $0x28] sm:$0xff] %v1441_v16  ;;  %v1449_v42 = vmax.f32 %v1417_v63, 0.0 }
 0x236   : > { %1481 = vst [vmem:[%s2615_s22 + $0x68] sm:$0xff] %v1449_v42 }
 0x245   : > { %v1339_v52 = vpop.f32.mrf.mxu2 }
 0x246   : > { %v1390_v14 = vmul.f32 %v2599_v25, %v1339_v52 }
 0x248   : > { %v1426_v31 = vadd.f32 %v2606_v34, %v1390_v14 }
 0x24a   : > { %v1458_v18 = vmax.f32 %v1426_v31, 0.0 }
 0x24c   : > { %1490 = vst [vmem:[%s2615_s22 + $0xb0] sm:$0xff] %v1458_v18  ;;  %v1359_v2 = vpop.f32.mrf.mxu3 }
 0x24d   : > { %v1398_v56 = vmul.f32 %v2599_v25, %v1359_v2  ;;  %v1341_v19 = vpop.f32.mrf.mxu2 }
 0x24e   : > { %v1391_v59 = vmul.f32 %v2599_v25, %v1341_v19 }
 0x24f   : > { %v1434_v23 = vadd.f32 %v2606_v34, %v1398_v56 }
 0x250   : > { %v1427_v49 = vadd.f32 %v2606_v34, %v1391_v59 }
 0x251   : > { %v1466_v24 = vmax.f32 %v1434_v23, 0.0 }
 0x252   : > { %v1459_v57 = vmax.f32 %v1427_v49, 0.0 }
 0x253   : > { %1498 = vst [vmem:[%s2615_s22 + $0xf0] sm:$0xff] %v1466_v24 }
 0x254   : > { %1491 = vst [vmem:[%s2615_s22 + $0xb8] sm:$0xff] %v1459_v57  ;;  %v1361_v60 = vpop.f32.mrf.mxu3 }
 0x255   : > { %v1399_v1 = vmul.f32 %v2599_v25, %v1361_v60 }
 0x257   : > { %v1435_v50 = vadd.f32 %v2606_v34, %v1399_v1 }
 0x259   : > { %v1467_v43 = vmax.f32 %v1435_v50, 0.0 }
 0x25b   : > { %1499 = vst [vmem:[%s2615_s22 + $0xf8] sm:$0xff] %v1467_v43 }
 0x25d   : > { %v1319_v36 = vpop.f32.mrf.mxu1 }
 0x25e   : > { %v1299_v40 = vpop.f32.mrf.mxu0  ;;  %v1382_v15 = vmul.f32 %v2599_v25, %v1319_v36 }
 0x25f   : > { %v1374_v9 = vmul.f32 %v2599_v25, %v1299_v40 }
 0x260   : > { %v1418_v53 = vadd.f32 %v2606_v34, %v1382_v15 }
 0x261   : > { %v1410_v38 = vadd.f32 %v2606_v34, %v1374_v9 }
 0x262   : > { %v1450_v62 = vmax.f32 %v1418_v53, 0.0 }
 0x263   : > { %v1442_v20 = vmax.f32 %v1410_v38, 0.0 }
 0x264   : > { %1482 = vst [vmem:[%s2615_s22 + $0x70] sm:$0xff] %v1450_v62 }
 0x265   : > { %1474 = vst [vmem:[%s2615_s22 + $0x30] sm:$0xff] %v1442_v20  ;;  %v1321_v39 = vpop.f32.mrf.mxu1 }
 0x266   : > { %v1301_v4 = vpop.f32.mrf.mxu0  ;;  %v1383_v30 = vmul.f32 %v2599_v25, %v1321_v39 }
 0x267   : > { %v1375_v32 = vmul.f32 %v2599_v25, %v1301_v4 }
 0x268   : > { %v1419_v27 = vadd.f32 %v2606_v34, %v1383_v30 }
 0x269   : > { %v1411_v28 = vadd.f32 %v2606_v34, %v1375_v32 }
 0x26a   : > { %v1451_v47 = vmax.f32 %v1419_v27, 0.0 }
 0x26b   : > { %v1443_v13 = vmax.f32 %v1411_v28, 0.0 }
 0x26c   : > { %1483 = vst [vmem:[%s2615_s22 + $0x78] sm:$0xff] %v1451_v47 }
 0x26d   : > { %1475 = vst [vmem:[%s2615_s22 + $0x38] sm:$0xff] %v1443_v13 }
 0x26e PF: > { %s14_s17 = sadd.s32 1, %s1783_s17   ;;  %s2764_s15 = smov %s1779_s16 }
 0x26f   : > { %p11_p5 = scmp.ge.s32.totalorder %s14_s17, 4   ;;  %s2765_s16 = smov %s2767_s18 }
 0x271   :  { %13 = sbr.rel (!%p11_p5) target bundleno = 2 (0x2), region = 67 }

</bundles_post_ra>
